<compile_context>
chip_gen: v7x
topology: tpu7x:2x2x1
jax: 0.10.0
libtpu: 0.0.40
codegen_flags: <defaults>
</compile_context>

<pallas_src>
import jax
import jax.numpy as jnp
from jax.experimental import pallas as pl
from jax.experimental.pallas import tpu as pltpu


def _round_up(x, m):
    return ((x + m - 1) // m) * m


def _combined_kernel(ids_ref,                 # SMEM (M_pad,) int32  (scalar prefetch)
                     emb_hbm,                 # HBM  (V, Hp) f32     (memory_space=ANY)
                     w_enc_ref, b_enc_ref,    # VMEM (Hp, Hp) bf16 / (1, Hp) f32
                     w_dn_ref, b_dn_ref,      # VMEM (Hp, Bp) bf16 / (1, Bp) f32
                     w_up_ref, b_up_ref,      # VMEM (Bp, Hp) bf16 / (1, Hp) f32
                     out_ref,                 # VMEM (TM, Hp) bf16
                     x_buf,                   # VMEM scratch (TM, Hp) f32
                     gather_sem):             # DMA semaphore (1,)
    tm = out_ref.shape[0]
    base = pl.program_id(0) * tm

    # ---- embedding gather: one row DMA per token, HBM -> VMEM ---------------
    # Issue every copy before waiting on any so the per-row latencies overlap.
    # All copies are (1, Hp) and signal the same semaphore, so one wait per
    # issued copy (same byte count) drains it exactly.
    def _issue(r, carry):
        tok = ids_ref[base + r]
        pltpu.make_async_copy(emb_hbm.at[pl.ds(tok, 1), :],
                              x_buf.at[pl.ds(r, 1), :],
                              gather_sem.at[0]).start()
        return carry

    jax.lax.fori_loop(0, tm, _issue, 0)

    def _drain(r, carry):
        pltpu.make_async_copy(emb_hbm.at[pl.ds(0, 1), :],
                              x_buf.at[pl.ds(r, 1), :],
                              gather_sem.at[0]).wait()
        return carry

    jax.lax.fori_loop(0, tm, _drain, 0)

    # bf16 on both MXU operands (native on v5e/v6e and required on v7x).
    x = x_buf[...].astype(w_enc_ref.dtype)

    # ---- text_encoder: Linear(H, H) + tanh (bf16 MXU, f32 accumulate) -------
    h = jnp.dot(x, w_enc_ref[...], preferred_element_type=jnp.float32)
    h = jnp.tanh(h + b_enc_ref[...])                                  # f32

    # ---- text_adapter: down-proj + ReLU + up-proj + residual ----------------
    d = jnp.dot(h.astype(w_dn_ref.dtype), w_dn_ref[...],
                preferred_element_type=jnp.float32)
    d = jnp.maximum(d + b_dn_ref[...], 0.0)
    u = jnp.dot(d.astype(w_up_ref.dtype), w_up_ref[...],
                preferred_element_type=jnp.float32)
    out_ref[...] = (h + u + b_up_ref[...]).astype(out_ref.dtype)


def prepare_padded_params(params, compute_dtype=jnp.bfloat16):
    """Zero-pad lane dims to multiples of 128 (once), cast matmul weights."""
    V, H = params["embedding"].shape
    Bn = params["w_down"].shape[1]
    Hp, Bp = _round_up(H, 128), _round_up(Bn, 128)

    def pad2(a, r, c):
        return jnp.pad(a, ((0, r - a.shape[0]), (0, c - a.shape[1])))

    # Padded columns of weights/biases are zero, so padded output columns are
    # exactly zero (tanh(0)=0, relu(0)=0) and slicing back to H is exact.
    # The embedding table stays in HBM and is row-gathered by DMA, so the
    # vocab dimension needs no padding.  Rows are kept f32 so each gathered
    # row is a whole, sublane-aligned (1,128) VMEM write; cast to bf16 happens
    # in-kernel right before the MXU (same rounding as casting the table).
    return {
        "embedding": pad2(params["embedding"], V, Hp).astype(jnp.float32),
        "w_enc":     pad2(params["w_enc"], Hp, Hp).astype(compute_dtype),
        "b_enc":     pad2(params["b_enc"], 1, Hp).astype(jnp.float32),
        "w_down":    pad2(params["w_down"], Hp, Bp).astype(compute_dtype),
        "b_down":    pad2(params["b_down"], 1, Bp).astype(jnp.float32),
        "w_up":      pad2(params["w_up"], Bp, Hp).astype(compute_dtype),
        "b_up":      pad2(params["b_up"], 1, Hp).astype(jnp.float32),
    }


def combined_model_forward(token_ids, padded, *, hidden, tm=512):
    """token_ids: int32 [batch, seq]. Returns bfloat16 [batch, seq, hidden]."""
    B, S = token_ids.shape
    M = B * S
    _, Hp = padded["embedding"].shape
    Bp = padded["w_down"].shape[1]

    # Row tile: 512 by default so per-grid-step overhead (~0.35 us) amortizes;
    # per-tile f32 activations are ~1 MB so VMEM is not the constraint.
    # Rounded to 16 so bf16 output blocks stay sublane-packed.
    # TODO(synk): for production M, cap block_rows so the grid has >= 2*num_TC
    # tiles and v7x's second TensorCore gets work ("parallel" grid axis).
    block_rows = min(tm, _round_up(M, 16))
    M_pad = _round_up(M, block_rows)
    grid = (M_pad // block_rows,)

    ids = jnp.pad(token_ids.reshape(-1).astype(jnp.int32), (0, M_pad - M))

    w_bytes = padded["w_enc"].dtype.itemsize
    flops = 2 * M_pad * (Hp * Hp + 2 * Hp * Bp)
    bytes_accessed = (M_pad * 4                       # ids
                      + M_pad * Hp * 4                # gathered embedding rows
                      + (Hp * Hp + 2 * Hp * Bp) * w_bytes
                      + (2 * Hp + Bp) * 4             # biases
                      + M_pad * Hp * 2)               # bf16 output

    # Weights/biases use constant index_maps (stay VMEM-resident across the
    # grid); at ~100 KB total even double-buffered, single-buffering via
    # pipeline_mode=pl.Buffered(1) is not worth the extra constraint here.
    out = pl.pallas_call(
        _combined_kernel,
        out_shape=jax.ShapeDtypeStruct((M_pad, Hp), jnp.bfloat16),
        grid_spec=pltpu.PrefetchScalarGridSpec(
            num_scalar_prefetch=1,
            grid=grid,
            in_specs=[
                pl.BlockSpec(memory_space=pl.ANY),                        # emb (HBM)
                pl.BlockSpec(padded["w_enc"].shape,  lambda i, ids_ref: (0, 0)),
                pl.BlockSpec(padded["b_enc"].shape,  lambda i, ids_ref: (0, 0)),
                pl.BlockSpec(padded["w_down"].shape, lambda i, ids_ref: (0, 0)),
                pl.BlockSpec(padded["b_down"].shape, lambda i, ids_ref: (0, 0)),
                pl.BlockSpec(padded["w_up"].shape,   lambda i, ids_ref: (0, 0)),
                pl.BlockSpec(padded["b_up"].shape,   lambda i, ids_ref: (0, 0)),
            ],
            out_specs=pl.BlockSpec((block_rows, Hp), lambda i, ids_ref: (i, 0)),
            scratch_shapes=[
                pltpu.VMEM((block_rows, Hp), jnp.float32),   # gathered x rows
                pltpu.SemaphoreType.DMA((1,)),               # gather completion
            ]),
        compiler_params=pltpu.CompilerParams(
            dimension_semantics=("parallel",),
            vmem_limit_bytes=32 * 1024 * 1024),
        cost_estimate=pl.CostEstimate(
            flops=int(flops),
            transcendentals=int(M_pad * Hp),
            bytes_accessed=int(bytes_accessed)),
    )(ids, padded["embedding"],
      padded["w_enc"], padded["b_enc"],
      padded["w_down"], padded["b_down"],
      padded["w_up"], padded["b_up"])

    # TODO(synk): for hidden << 128, pack 4 tokens per 128-lane output row
    # inside the kernel so no padded zero columns are ever written back.
    return out[:M, :hidden].reshape(B, S, hidden)


def _reference_forward(token_ids, params):
    x = params["embedding"][token_ids]                        # [B, S, H]
    h = jnp.tanh(x @ params["w_enc"] + params["b_enc"])       # encoder
    d = jnp.maximum(h @ params["w_down"] + params["b_down"], 0.0)
    return h + d @ params["w_up"] + params["b_up"]            # adapter + residual


def init_params(key, vocab=100, hidden=32, bottleneck=16):
    k = jax.random.split(key, 4)
    scale = 0.1
    return {
        "embedding": scale * jax.random.normal(k[0], (vocab, hidden), jnp.float32),
        "w_enc":     scale * jax.random.normal(k[1], (hidden, hidden), jnp.float32),
        "b_enc":     jnp.zeros((1, hidden), jnp.float32),
        "w_down":    scale * jax.random.normal(k[2], (hidden, bottleneck), jnp.float32),
        "b_down":    jnp.zeros((1, bottleneck), jnp.float32),
        "w_up":      scale * jax.random.normal(k[3], (bottleneck, hidden), jnp.float32),
        "b_up":      jnp.zeros((1, hidden), jnp.float32),
    }


if __name__ == "__main__":
    key = jax.random.PRNGKey(0)
    pkey, dkey = jax.random.split(key)

    hidden, vocab, bottleneck = 32, 100, 16
    params = init_params(pkey, vocab=vocab, hidden=hidden, bottleneck=bottleneck)
    padded = prepare_padded_params(params, compute_dtype=jnp.bfloat16)

    batch, seq = 2, 8
    token_ids = jax.random.randint(dkey, (batch, seq), 0, vocab, dtype=jnp.int32)

    out = combined_model_forward(token_ids, padded, hidden=hidden)
    out = jax.block_until_ready(out)

    ref = _reference_forward(token_ids, params)
    assert out.shape == (batch, seq, hidden), out.shape
    # bf16 matmul inputs + bf16 output vs f32 reference -> loose tolerance.
    out_f32 = out.astype(jnp.float32)
    max_err = float(jnp.max(jnp.abs(out_f32 - ref)))
    assert jnp.allclose(out_f32, ref, atol=5e-3, rtol=3e-2), (
        "mismatch vs reference, max abs err = " + str(max_err))

    print("KERNEL_OK")
</pallas_src>

<mosaic_0001>
module attributes {stable_mosaic.version = 11 : i64} {
  func.func @_combined_kernel(%arg0: i32, %arg1: memref<16xi32, #tpu.memory_space<smem>>, %arg2: memref<100x128xf32, #tpu.memory_space<any>>, %arg3: memref<128x128xbf16, #tpu.memory_space<vmem>>, %arg4: memref<1x128xf32, #tpu.memory_space<vmem>>, %arg5: memref<128x128xbf16, #tpu.memory_space<vmem>>, %arg6: memref<1x128xf32, #tpu.memory_space<vmem>>, %arg7: memref<128x128xbf16, #tpu.memory_space<vmem>>, %arg8: memref<1x128xf32, #tpu.memory_space<vmem>>, %arg9: memref<16x128xbf16, #tpu.memory_space<vmem>>, %arg10: memref<16x128xf32, #tpu.memory_space<vmem>>, %arg11: memref<1x!tpu.dma_semaphore, #tpu.memory_space<semaphore_mem>>) attributes {dimension_semantics = [#tpu.dimension_semantics<parallel>], iteration_bounds = array<i64: 1>, scalar_prefetch = 1 : i64, scratch_operands = 2 : i64, tpu.core_type = #tpu.core_type<tc>, window_params = [{}, {pipeline_mode = #tpu.pipeline_mode<synchronous>, transform_indices = @transform_1, window_bounds = array<i64: 128, 128>}, {pipeline_mode = #tpu.pipeline_mode<synchronous>, transform_indices = @transform_2, window_bounds = array<i64: 1, 128>}, {pipeline_mode = #tpu.pipeline_mode<synchronous>, transform_indices = @transform_3, window_bounds = array<i64: 128, 128>}, {pipeline_mode = #tpu.pipeline_mode<synchronous>, transform_indices = @transform_4, window_bounds = array<i64: 1, 128>}, {pipeline_mode = #tpu.pipeline_mode<synchronous>, transform_indices = @transform_5, window_bounds = array<i64: 128, 128>}, {pipeline_mode = #tpu.pipeline_mode<synchronous>, transform_indices = @transform_6, window_bounds = array<i64: 1, 128>}, {transform_indices = @transform_7, window_bounds = array<i64: 16, 128>}]} {
    %c16_i32 = arith.constant 16 : i32
    %0 = arith.muli %arg0, %c16_i32 : i32
    %c0_i32 = arith.constant 0 : i32
    %c16_i32_0 = arith.constant 16 : i32
    %1 = arith.addi %c0_i32, %c16_i32_0 : i32
    %c1_i32 = arith.constant 1 : i32
    scf.for %arg12 = %c0_i32 to %1 step %c1_i32  : i32 {
      %28 = arith.addi %0, %arg12 : i32
      %29 = arith.index_cast %28 : i32 to index
      %30 = memref.load %arg1[%29] : memref<16xi32, #tpu.memory_space<smem>>
      %c0_i32_24 = arith.constant 0 : i32
      %c0_i32_25 = arith.constant 0 : i32
      %31 = tpu.memref_slice %arg2[%30, %c0_i32_25] : memref<100x128xf32, #tpu.memory_space<any>> -> memref<1x128xf32, #tpu.memory_space<any>>
      %c0_i32_26 = arith.constant 0 : i32
      %32 = tpu.memref_slice %arg10[%arg12, %c0_i32_26] : memref<16x128xf32, #tpu.memory_space<vmem>> -> memref<1x128xf32, #tpu.memory_space<vmem>>
      %33 = tpu.memref_slice %arg11[%c0_i32_24] : memref<1x!tpu.dma_semaphore, #tpu.memory_space<semaphore_mem>> -> memref<1x!tpu.dma_semaphore, #tpu.memory_space<semaphore_mem>>
      %34 = tpu.memref_squeeze %33 : memref<1x!tpu.dma_semaphore, #tpu.memory_space<semaphore_mem>> -> memref<!tpu.dma_semaphore, #tpu.memory_space<semaphore_mem>>
      tpu.enqueue_dma source(%31 : memref<1x128xf32, #tpu.memory_space<any>>) target(%32 : memref<1x128xf32, #tpu.memory_space<vmem>>) target_semaphore(%34 : memref<!tpu.dma_semaphore, #tpu.memory_space<semaphore_mem>>)
    }
    %c16_i32_1 = arith.constant 16 : i32
    %c0_i32_2 = arith.constant 0 : i32
    %c16_i32_3 = arith.constant 16 : i32
    %2 = arith.addi %c0_i32_2, %c16_i32_3 : i32
    %c1_i32_4 = arith.constant 1 : i32
    scf.for %arg12 = %c0_i32_2 to %2 step %c1_i32_4  : i32 {
      %c0_i32_24 = arith.constant 0 : i32
      %c0_i32_25 = arith.constant 0 : i32
      %c0_i32_26 = arith.constant 0 : i32
      %28 = tpu.memref_slice %arg2[%c0_i32_25, %c0_i32_26] : memref<100x128xf32, #tpu.memory_space<any>> -> memref<1x128xf32, #tpu.memory_space<any>>
      %c0_i32_27 = arith.constant 0 : i32
      %29 = tpu.memref_slice %arg10[%arg12, %c0_i32_27] : memref<16x128xf32, #tpu.memory_space<vmem>> -> memref<1x128xf32, #tpu.memory_space<vmem>>
      %30 = tpu.memref_slice %arg11[%c0_i32_24] : memref<1x!tpu.dma_semaphore, #tpu.memory_space<semaphore_mem>> -> memref<1x!tpu.dma_semaphore, #tpu.memory_space<semaphore_mem>>
      %31 = tpu.memref_squeeze %30 : memref<1x!tpu.dma_semaphore, #tpu.memory_space<semaphore_mem>> -> memref<!tpu.dma_semaphore, #tpu.memory_space<semaphore_mem>>
      tpu.wait_dma2 semaphore(%31 : memref<!tpu.dma_semaphore, #tpu.memory_space<semaphore_mem>>) src(%28 : memref<1x128xf32, #tpu.memory_space<any>>) dst(%29 : memref<1x128xf32, #tpu.memory_space<vmem>>)
    }
    %c16_i32_5 = arith.constant 16 : i32
    %c0 = arith.constant 0 : index
    %c0_6 = arith.constant 0 : index
    %3 = vector.load %arg10[%c0, %c0_6] : memref<16x128xf32, #tpu.memory_space<vmem>>, vector<16x128xf32>
    %4 = arith.truncf %3 : vector<16x128xf32> to vector<16x128xbf16>
    %c0_7 = arith.constant 0 : index
    %c0_8 = arith.constant 0 : index
    %5 = vector.load %arg3[%c0_7, %c0_8] : memref<128x128xbf16, #tpu.memory_space<vmem>>, vector<128x128xbf16>
    %cst = arith.constant dense<0.000000e+00> : vector<16x128xf32>
    %6 = tpu.matmul %4, %5, %cst {dimension_numbers = #tpu.dot_dimension_numbers<[1], [0], [0], [1], [0, 0, 1, 1], [], []>} : vector<16x128xbf16>, vector<128x128xbf16>, vector<16x128xf32> -> vector<16x128xf32>
    %c0_9 = arith.constant 0 : index
    %c0_10 = arith.constant 0 : index
    %7 = vector.load %arg4[%c0_9, %c0_10] : memref<1x128xf32, #tpu.memory_space<vmem>>, vector<1x128xf32>
    %8 = vector.broadcast %7 : vector<1x128xf32> to vector<16x128xf32>
    %9 = arith.addf %6, %8 : vector<16x128xf32>
    %10 = math.tanh %9 : vector<16x128xf32>
    %11 = arith.truncf %10 : vector<16x128xf32> to vector<16x128xbf16>
    %c0_11 = arith.constant 0 : index
    %c0_12 = arith.constant 0 : index
    %12 = vector.load %arg5[%c0_11, %c0_12] : memref<128x128xbf16, #tpu.memory_space<vmem>>, vector<128x128xbf16>
    %cst_13 = arith.constant dense<0.000000e+00> : vector<16x128xf32>
    %13 = tpu.matmul %11, %12, %cst_13 {dimension_numbers = #tpu.dot_dimension_numbers<[1], [0], [0], [1], [0, 0, 1, 1], [], []>} : vector<16x128xbf16>, vector<128x128xbf16>, vector<16x128xf32> -> vector<16x128xf32>
    %c0_14 = arith.constant 0 : index
    %c0_15 = arith.constant 0 : index
    %14 = vector.load %arg6[%c0_14, %c0_15] : memref<1x128xf32, #tpu.memory_space<vmem>>, vector<1x128xf32>
    %15 = vector.broadcast %14 : vector<1x128xf32> to vector<16x128xf32>
    %16 = arith.addf %13, %15 : vector<16x128xf32>
    %cst_16 = arith.constant 0.000000e+00 : f32
    %17 = vector.broadcast %cst_16 : f32 to vector<16x128xf32>
    %18 = arith.maximumf %16, %17 : vector<16x128xf32>
    %19 = arith.truncf %18 : vector<16x128xf32> to vector<16x128xbf16>
    %c0_17 = arith.constant 0 : index
    %c0_18 = arith.constant 0 : index
    %20 = vector.load %arg7[%c0_17, %c0_18] : memref<128x128xbf16, #tpu.memory_space<vmem>>, vector<128x128xbf16>
    %cst_19 = arith.constant dense<0.000000e+00> : vector<16x128xf32>
    %21 = tpu.matmul %19, %20, %cst_19 {dimension_numbers = #tpu.dot_dimension_numbers<[1], [0], [0], [1], [0, 0, 1, 1], [], []>} : vector<16x128xbf16>, vector<128x128xbf16>, vector<16x128xf32> -> vector<16x128xf32>
    %22 = arith.addf %10, %21 : vector<16x128xf32>
    %c0_20 = arith.constant 0 : index
    %c0_21 = arith.constant 0 : index
    %23 = vector.load %arg8[%c0_20, %c0_21] : memref<1x128xf32, #tpu.memory_space<vmem>>, vector<1x128xf32>
    %24 = vector.broadcast %23 : vector<1x128xf32> to vector<16x128xf32>
    %25 = arith.addf %22, %24 : vector<16x128xf32>
    %26 = arith.truncf %25 : vector<16x128xf32> to vector<16x128xbf16>
    %c0_22 = arith.constant 0 : index
    %c0_23 = arith.constant 0 : index
    %27 = vector.load %arg9[%c0_22, %c0_23] : memref<16x128xbf16, #tpu.memory_space<vmem>>, vector<16x128xbf16>
    tpu.vector_store %arg9[%c0_22, %c0_23], %26 {strides = array<i32>} : memref<16x128xbf16, #tpu.memory_space<vmem>>, vector<16x128xbf16>,
    return
  }
  func.func @transform_1(%arg0: i32, %arg1: memref<16xi32, #tpu.memory_space<smem>>) -> (i32, i32) {
    %c0_i32 = arith.constant 0 : i32
    %c0_i32_0 = arith.constant 0 : i32
    %c0_i32_1 = arith.constant 0 : i32
    return %c0_i32, %c0_i32_0 : i32, i32
  }
  func.func @transform_2(%arg0: i32, %arg1: memref<16xi32, #tpu.memory_space<smem>>) -> (i32, i32) {
    %c0_i32 = arith.constant 0 : i32
    %c0_i32_0 = arith.constant 0 : i32
    %c0_i32_1 = arith.constant 0 : i32
    return %c0_i32, %c0_i32_0 : i32, i32
  }
  func.func @transform_3(%arg0: i32, %arg1: memref<16xi32, #tpu.memory_space<smem>>) -> (i32, i32) {
    %c0_i32 = arith.constant 0 : i32
    %c0_i32_0 = arith.constant 0 : i32
    %c0_i32_1 = arith.constant 0 : i32
    return %c0_i32, %c0_i32_0 : i32, i32
  }
  func.func @transform_4(%arg0: i32, %arg1: memref<16xi32, #tpu.memory_space<smem>>) -> (i32, i32) {
    %c0_i32 = arith.constant 0 : i32
    %c0_i32_0 = arith.constant 0 : i32
    %c0_i32_1 = arith.constant 0 : i32
    return %c0_i32, %c0_i32_0 : i32, i32
  }
  func.func @transform_5(%arg0: i32, %arg1: memref<16xi32, #tpu.memory_space<smem>>) -> (i32, i32) {
    %c0_i32 = arith.constant 0 : i32
    %c0_i32_0 = arith.constant 0 : i32
    %c0_i32_1 = arith.constant 0 : i32
    return %c0_i32, %c0_i32_0 : i32, i32
  }
  func.func @transform_6(%arg0: i32, %arg1: memref<16xi32, #tpu.memory_space<smem>>) -> (i32, i32) {
    %c0_i32 = arith.constant 0 : i32
    %c0_i32_0 = arith.constant 0 : i32
    %c0_i32_1 = arith.constant 0 : i32
    return %c0_i32, %c0_i32_0 : i32, i32
  }
  func.func @transform_7(%arg0: i32, %arg1: memref<16xi32, #tpu.memory_space<smem>>) -> (i32, i32) {
    %c0_i32 = arith.constant 0 : i32
    %c0_i32_0 = arith.constant 0 : i32
    return %arg0, %c0_i32 : i32, i32
  }
}

</mosaic_0001>

<bundles_post_ra>
// kernel: tpu_custom_call.1
= control target key start
LH: loop header
LB: loop body
LE: loop exit
PB: predicated region body
PF: predicated region fallthrough
CT: control target
= control target key end

     0   :  { %s1018_s0 = inlined_call_operand.hbm [shape: s32[16], index: 0, kind: input, shape index: {}]   ;;  %s1019_s1 = inlined_call_operand.hbm [shape: f32[100,128], index: 1, kind: input, shape index: {}]   ;;  %s1020_s2 = inlined_call_operand.hbm [shape: bf16[128,128], index: 2, kind: input, shape index: {}]   ;;  %s1021_s3 = inlined_call_operand.vmem [shape: f32[1,128], index: 3, kind: input, shape index: {}]   ;;  %s1022_s4 = inlined_call_operand.hbm [shape: bf16[128,128], index: 4, kind: input, shape index: {}]   ;;  %s1023_s5 = inlined_call_operand.vmem [shape: f32[1,128], index: 5, kind: input, shape index: {}]   ;;  %s1024_s6 = inlined_call_operand.hbm [shape: bf16[128,128], index: 6, kind: input, shape index: {}]   ;;  %s1025_s7 = inlined_call_operand.vmem [shape: f32[1,128], index: 7, kind: input, shape index: {}]   ;;  %s1026_s8 = inlined_call_operand.hbm [shape: bf16[16,128], index: 8, kind: output, shape index: {}]  }
   0x1   :  { %s678_s29 = scalar_lea.hbm %s1018_s0, 16 }
   0x2   :  { %p679_p0 = scmp.ne.s32.totalorder %s1018_s0, %s678_s29  ;;  %p682_p1 = scmp.lt.u32.totalorder %s678_s29, %s1018_s0 }
   0x4   :  { %p684_p2 = pnand %p682_p1, %p679_p0 }
   0x6   :  { %687 = shalt.err (!%p684_p2)  }
   0x7   :  { %s826_s12 = smov [#allocation5]  }
   0x8   :  { %14 = dma.hbm_to_smem %s1018_s0, 16, %s826_s12, [#allocation4] }
   0x9   :  { %808 = dma.done.wait [#allocation4], 16 }
   0xa   :  { %809 = vsyncadd [#allocation4], 4294967280 }
   0xb   :  { %16 = sfence }
   0xc   :  { %17 = vsyncpa [#allocation7], 0 }
   0xd   :  { %18 = vsyncpa [#allocation10], 0 }
   0xe   :  { %19 = vsyncpa [#allocation8], 0  ;;  %s827_s15 = smov [#allocation9]   ;;  %s828_s17 = smov [#allocation6]  }
   0xf   :  { %s39_s16 = sshll.u32 %s827_s15, 4  ;;  %s25_s18 = sshll.u32 %s828_s17, 4  ;;  %s40_s16 = int_to_ptr.vmem [resolvable:$true] %s39_s16  ;;  %s893_s18 = int_to_ptr.vmem [resolvable:$true] %s25_s18 }
  0x10   :  { %s688_s21 = scalar_lea.hbm %s1022_s4, 1024 }
  0x11   :  { %p689_p3 = scmp.ne.s32.totalorder %s1022_s4, %s688_s21  ;;  %p692_p4 = scmp.lt.u32.totalorder %s688_s21, %s1022_s4 }
  0x13   :  { %p694_p5 = pnand %p692_p4, %p689_p3 }
  0x15   :  { %697 = shalt.err (!%p694_p5)
}
  0x16   :  { %s698_s25 = scalar_lea.vmem %s40_s16, 1024  ;;  %p703_p7 = scmp.lt.s32.totalorder %s40_s16, %s40_s16 }
  0x17   :  { %p699_p6 = scmp.ne.s32.totalorder %s40_s16, %s698_s25  ;;  %p704_p8 = scmp.lt.s32.totalorder %s698_s25, %s698_s25 }
  0x19   :  { %p705_p9 = por %p704_p8, %p703_p7 }
  0x1b   :  { %p706_p10 = pnand %p705_p9, %p699_p6 }
  0x1d   :  { %709 = shalt.err (!%p706_p10)
}
  0x1e   :  { %s829_s26 = smov 64   ;;  %s830_s27 = smov 4  }
  0x1f   :  { %45 = dma.hbm_to_vmem [thread:$0]  %s1022_s4, 1024, %s40_s16, [#allocation10], %s829_s26, %s829_s26, %s830_s27  }
  0x20   :  { %s710_s10 = scalar_lea.hbm %s1020_s2, 1024 }
  0x21   :  { %p711_p11 = scmp.ne.s32.totalorder %s1020_s2, %s710_s10  ;;  %p714_p12 = scmp.lt.u32.totalorder %s710_s10, %s1020_s2 }
  0x23   :  { %p716_p13 = pnand %p714_p12, %p711_p11 }
  0x25   :  { %719 = shalt.err (!%p716_p13)
}
  0x26   :  { %s720_s15 = scalar_lea.vmem %s893_s18, 1024  ;;  %p725_p1 = scmp.lt.s32.totalorder %s893_s18, %s893_s18 }
  0x27   :  { %p721_p0 = scmp.ne.s32.totalorder %s893_s18, %s720_s15  ;;  %p726_p2 = scmp.lt.s32.totalorder %s720_s15, %s720_s15 }
  0x29   :  { %p727_p3 = por %p726_p2, %p725_p1 }
  0x2b   :  { %p728_p4 = pnand %p727_p3, %p721_p0 }
  0x2d   :  { %731 = shalt.err (!%p728_p4)
}
  0x2e   :  { %31 = dma.hbm_to_vmem [thread:$0]  %s1020_s2, 1024, %s893_s18, [#allocation7], %s829_s26, %s829_s26, %s830_s27  }
  0x2f   :  { %s831_s17 = smov [#allocation11]   ;;  %s732_s22 = scalar_lea.hbm %s1024_s6, 1024 }
  0x30   :  { %s53_s19 = sshll.u32 %s831_s17, 4  ;;  %p733_p5 = scmp.ne.s32.totalorder %s1024_s6, %s732_s22  ;;  %s54_s19 = int_to_ptr.vmem [resolvable:$true] %s53_s19 }
  0x31   :  { %p736_p6 = scmp.lt.u32.totalorder %s732_s22, %s1024_s6 }
  0x33   :  { %p738_p7 = pnand %p736_p6, %p733_p5 }
  0x35   :  { %741 = shalt.err (!%p738_p7)
}
  0x36   :  { %s742_s28 = scalar_lea.vmem %s54_s19, 1024  ;;  %p747_p9 = scmp.lt.s32.totalorder %s54_s19, %s54_s19 }
  0x37   :  { %p743_p8 = scmp.ne.s32.totalorder %s54_s19, %s742_s28  ;;  %p748_p10 = scmp.lt.s32.totalorder %s742_s28, %s742_s28 }
  0x39   :  { %p749_p11 = por %p748_p10, %p747_p9 }
  0x3b   :  { %p750_p12 = pnand %p749_p11, %p743_p8 }
  0x3d   :  { %753 = shalt.err (!%p750_p12)
}
  0x3e   :  { %59 = dma.hbm_to_vmem [thread:$0]  %s1024_s6, 1024, %s54_s19, [#allocation10], %s829_s26, %s829_s26, %s830_s27  }
  0x3f   :  { %810 = dma.done.wait [#allocation7], 1024  }
  0x40   :  { %811 = vsyncadd [#allocation7], 4294966272 }
  0x41   :  { %812 = dma.done.wait [#allocation10], 2048  }
  0x42   :  { %813 = vsyncadd [#allocation10], 4294965248  ;;  %s945_s29 = smov 0  }
  0x43 LB: > { %s80_s30 = sld [smem:[#allocation5 + %s820_s29]]  ;;  %s83_s9 = scalar_lea.vmem [#allocation2], %s820_s29  ;;  %s820_s29 = sphi %s945_s29, %s78_s29  }
  0x44   : > { %s91_s10 = sshll.u32 %s83_s9, 4  ;;  %s756_s16 = scalar_lea.hbm %s1019_s1, 1664  ;;  %s92_s10 = int_to_ptr.vmem [resolvable:$true] %s91_s10 }
  0x49   : > { %s500_s11 = sshll.u32 %s80_s30, 4 }
  0x4a   : > { %s82_s13 = scalar_lea.hbm %s1019_s1, %s500_s11 }
  0x4b   : > { %s754_s14 = scalar_lea.hbm %s82_s13, 16  ;;  %p757_p0 = scmp.lt.u32.totalorder %s82_s13, %s1019_s1 }
  0x4c   : > { %p755_p13 = scmp.ne.s32.totalorder %s82_s13, %s754_s14  ;;  %p758_p1 = scmp.lt.u32.totalorder %s756_s16, %s754_s14 }
  0x4d   : > { %p760_p3 = scmp.lt.u32.totalorder %s754_s14, %s82_s13 }
  0x4e   : > { %p759_p2 = por %p758_p1, %p757_p0 }
  0x50   : > { %p761_p4 = por %p760_p3, %p759_p2 }
  0x52   : > { %p762_p5 = pnand %p761_p4, %p755_p13 }
  0x54   : > { %765 = shalt.err (!%p762_p5)  }
  0x55   : > { %s766_s20 = scalar_lea.vmem %s92_s10, 16  ;;  %s832_s21 = smov [#allocation2]  }
  0x56   : > { %p767_p6 = scmp.ne.s32.totalorder %s92_s10, %s766_s20  ;;  %s768_s22 = sshll.u32 %s832_s21, 4  ;;  %s769_s22 = int_to_ptr.vmem [resolvable:$false] %s768_s22 }
  0x57   : > { %s770_s23 = scalar_lea.vmem %s769_s22, 256  ;;  %p771_p7 = scmp.lt.s32.totalorder %s92_s10, %s769_s22 }
  0x58   : > { %p772_p8 = scmp.lt.s32.totalorder %s770_s23, %s766_s20 }
  0x5a   : > { %p773_p9 = por %p772_p8, %p771_p7 }
  0x5c   : > { %p774_p10 = pnand %p773_p9, %p767_p6 }
  0x5e   : > { %777 = shalt.err (!%p774_p10)  }
  0x5f   : > { %94 = dma.hbm_to_vmem [thread:$0]  %s82_s13, 16, %s92_s10, [#allocation3] }
  0x60   : > { %s78_s29 = sadd.s32 1, %s820_s29  }
  0x61   : > { %p75_p11 = scmp.ge.s32.totalorder %s78_s29, 16  }
  0x62   :  { %s822_s0 = smov (%p75_p11), 0  }
  0x63   :  { %77 = sbr.rel (!%p75_p11) target bundleno = 67 (0x43), region = 76 }
  0x6a LB: > { %814 = dma.done.wait [#allocation3], 16  ;;  %s824_s0 = sphi %s822_s0, %s100_s0  }
  0x6b   : > { %815 = vsyncadd [#allocation3], 4294967280  ;;  %s100_s0 = sadd.s32 1, %s824_s0  }
  0x6c   : > { %p97_p12 = scmp.ge.s32.totalorder %s100_s0, 16  }
  0x6d   :  { %v650_v0 = vld [vmem:[#allocation6] sm:$0xff] (%p97_p12)   ;;  %v833_v1 = vmov (%p97_p12), 0.0   ;;  %v651_v2 = vld [vmem:[#allocation6 + $0x8] sm:$0xff] (%p97_p12)   ;;  %vm834_vm0 = vmmov (%p97_p12), 0   ;;  %v652_v3 = vld [vmem:[#allocation6 + $0x10] sm:$0xff] (%p97_p12)  }
  0x6e   :  { %99 = sbr.rel (!%p97_p12) target bundleno = 106 (0x6a), region = 87  ;;  %565 = vmatprep.subr.bf16.mxu0 (%p97_p12), %v833_v1  ;;  %585 = vmatprep.subr.bf16.mxu1 (%p97_p12), %v833_v1  ;;  %v658_v4 = vld [vmem:[#allocation9] sm:$0xff] (%p97_p12)   ;;  %v653_v5 = vld [vmem:[#allocation6 + $0x18] sm:$0xff] (%p97_p12)   ;;  %v659_v6 = vld [vmem:[#allocation9 + $0x8] sm:$0xff] (%p97_p12)  }
  0x6f   :  { %566 = vmatpush3.bf16.msra.mxu0 (%p97_p12), %v650_v0  ;;  %581 = vmatprep.mubr.msk.bf16.mxu0 (%p97_p12), %vm834_vm0, %v833_v1  ;;  %v654_v7 = vld [vmem:[#allocation6 + $0x20] sm:$0xff] (%p97_p12)   ;;  %v660_v8 = vld [vmem:[#allocation9 + $0x10] sm:$0xff] (%p97_p12)   ;;  %v655_v9 = vld [vmem:[#allocation6 + $0x28] sm:$0xff] (%p97_p12)  }
  0x70   :  { %567 = vmatprep.subr.bf16.mxu0 (%p97_p12), %v833_v1  ;;  %601 = vmatprep.mubr.msk.bf16.mxu1 (%p97_p12), %vm834_vm0, %v833_v1  ;;  %v661_v10 = vld [vmem:[#allocation9 + $0x18] sm:$0xff] (%p97_p12)   ;;  %v656_v11 = vld [vmem:[#allocation6 + $0x30] sm:$0xff] (%p97_p12)   ;;  %v662_v16 = vld [vmem:[#allocation9 + $0x20] sm:$0xff] (%p97_p12)  }
  0x71   :  { %586 = vmatpush3.bf16.msra.mxu1 (%p97_p12), %v658_v4  ;;  %v657_v12 = vld [vmem:[#allocation6 + $0x38] sm:$0xff] (%p97_p12)   ;;  %v104_v13 = vld [vmem:[#allocation2] sm:$0xff] (%p97_p12)  ;;  %v663_v17 = vld [vmem:[#allocation9 + $0x28] sm:$0xff] (%p97_p12)  }
  0x72   :  { %587 = vmatprep.subr.bf16.mxu1 (%p97_p12), %v833_v1  ;;  %v105_v14 = vld [vmem:[#allocation2 + $0x8] sm:$0xff] (%p97_p12)  ;;  %v664_v18 = vld [vmem:[#allocation9 + $0x30] sm:$0xff] (%p97_p12)   ;;  %v666_v20 = vld [vmem:[#allocation11] sm:$0xff] (%p97_p12)  }
  0x73   :  { %568 = vmatpush3.bf16.msra.mxu0 (%p97_p12), %v651_v2  ;;  %v106_v15 = vpack.c.bf16 (%p97_p12), %v105_v14, %v104_v13  ;;  %v665_v19 = vld [vmem:[#allocation9 + $0x38] sm:$0xff] (%p97_p12)   ;;  %v667_v21 = vld [vmem:[#allocation11 + $0x8] sm:$0xff] (%p97_p12)   ;;  %v668_v22 = vld [vmem:[#allocation11 + $0x10] sm:$0xff] (%p97_p12)  }
  0x74   :  { %569 = vmatprep.subr.bf16.mxu0 (%p97_p12), %v833_v1  ;;  %v669_v23 = vld [vmem:[#allocation11 + $0x18] sm:$0xff] (%p97_p12)   ;;  %v670_v24 = vld [vmem:[#allocation11 + $0x20] sm:$0xff] (%p97_p12)   ;;  %v671_v25 = vld [vmem:[#allocation11 + $0x28] sm:$0xff] (%p97_p12)  }
  0x75   :  { %588 = vmatpush3.bf16.msra.mxu1 %v659_v6  ;;  %v501_v26 = vld [vmem:[%s1021_s3] ss:$0 sm:$0xff]  ;;  %v673_v37 = vld [vmem:[#allocation11 + $0x38] sm:$0xff]  }
  0x76   :  { %589 = vmatprep.subr.bf16.mxu1 %v833_v1  ;;  %v672_v36 = vld [vmem:[#allocation11 + $0x30] sm:$0xff]  }
  0x77   :  { %570 = vmatpush3.bf16.msra.mxu0 %v652_v3  ;;  %v510_v38 = vld [vmem:[%s1023_s5] ss:$0 sm:$0xff]  ;;  %s835_s5 = smov [#allocation12]  }
  0x78   :  { %571 = vmatprep.subr.bf16.mxu0 %v833_v1  ;;  %v527_v51 = vld [vmem:[%s1025_s7] ss:$0 sm:$0xff]  ;;  %s468_s18 = sshll.u32 %s835_s5, 4  ;;  %s469_s18 = int_to_ptr.vmem [resolvable:$true] %s468_s18 }
  0x79   :  { %590 = vmatpush3.bf16.msra.mxu1 %v660_v8  ;;  %s778_s29 = scalar_lea.vmem %s469_s18, 128  ;;  %p783_p0 = scmp.lt.s32.totalorder %s469_s18, %s469_s18 }
  0x7a   :  { %591 = vmatprep.subr.bf16.mxu1 %v833_v1  ;;  %p779_p13 = scmp.ne.s32.totalorder %s469_s18, %s778_s29  ;;  %p784_p1 = scmp.lt.s32.totalorder %s778_s29, %s778_s29 }
  0x7b   :  { %572 = vmatpush3.bf16.msra.mxu0 %v653_v5 }
  0x7c   :  { %573 = vmatprep.subr.bf16.mxu0 %v833_v1  ;;  %p785_p2 = por %p784_p1, %p783_p0 }
  0x7d   :  { %592 = vmatpush3.bf16.msra.mxu1 %v661_v10 }
  0x7e   :  { %593 = vmatprep.subr.bf16.mxu1 %v833_v1  ;;  %p786_p3 = pnand %p785_p2, %p779_p13 }
  0x7f   :  { %574 = vmatpush3.bf16.msra.mxu0 %v654_v7 }
  0x80   :  { %575 = vmatprep.subr.bf16.mxu0 %v833_v1 }
  0x81   :  { %594 = vmatpush3.bf16.msra.mxu1 %v662_v16 }
  0x82   :  { %595 = vmatprep.subr.bf16.mxu1 %v833_v1 }
  0x83   :  { %576 = vmatpush3.bf16.msra.mxu0 %v655_v9 }
  0x84   :  { %577 = vmatprep.subr.bf16.mxu0 %v833_v1 }
  0x85   :  { %596 = vmatpush3.bf16.msra.mxu1 %v663_v17 }
  0x86   :  { %597 = vmatprep.subr.bf16.mxu1 %v833_v1 }
  0x87   :  { %578 = vmatpush3.bf16.msra.mxu0 %v656_v11 }
  0x88   :  { %579 = vmatprep.subr.bf16.mxu0 %v833_v1 }
  0x89   :  { %598 = vmatpush3.bf16.msra.mxu1 %v664_v18 }
  0x8a   :  { %599 = vmatprep.subr.bf16.mxu1 %v833_v1 }
  0x8b   :  { %580 = vmatpush3.bf16.msra.mxu0 %v657_v12 }
  0x8c   :  { %605 = vmatprep.subr.bf16.mxu0 %v833_v1 }
  0x8d   :  { %600 = vmatpush3.bf16.msra.mxu1 %v665_v19 }
  0x8e   :  { %582 = vmatmul.mubr.bf16.vlgmr.msra.gmra.mrb[0].mxu0 %v106_v15 }
  0x8f   :  { %621 = vmatprep.mubr.msk.bf16.mxu0 %vm834_vm0, %v833_v1  ;;  %606 = vmatpush3.bf16.msra.mxu0 %v666_v20 }
  0x90   :  { %607 = vmatprep.subr.bf16.mxu0 %v833_v1 }
  0x93   :  { %608 = vmatpush3.bf16.msra.mxu0 %v667_v21 }
  0x94   :  { %609 = vmatprep.subr.bf16.mxu0 %v833_v1 }
  0x97   :  { %610 = vmatpush3.bf16.msra.mxu0 %v668_v22 }
  0x98   :  { %611 = vmatprep.subr.bf16.mxu0 %v833_v1 }
  0x9b   :  { %612 = vmatpush3.bf16.msra.mxu0 %v669_v23 }
  0x9c   :  { %613 = vmatprep.subr.bf16.mxu0 %v833_v1 }
  0x9f   :  { %614 = vmatpush3.bf16.msra.mxu0 %v670_v24 }
  0xa0   :  { %615 = vmatprep.subr.bf16.mxu0 %v833_v1 }
  0xa3   :  { %616 = vmatpush3.bf16.msra.mxu0 %v671_v25 }
  0xa4   :  { %617 = vmatprep.subr.bf16.mxu0 %v833_v1 }
  0xa7   :  { %618 = vmatpush3.bf16.msra.mxu0 %v672_v36 }
  0xa8   :  { %619 = vmatprep.subr.bf16.mxu0 %v833_v1 }
  0xab   :  { %620 = vmatpush3.bf16.msra.mxu0 %v673_v37 }
 0x161   :  { %v212_v27 = vpop.f32.mrb[0].mxu0 }
 0x162   :  { %v213_v28 = vadd.f32 %v501_v26, %v212_v27  ;;  %v583_v29 = vpop.f32.mrb[1].mxu0 }
 0x163   :  { %v215_v30 = vpop.f32.mrb[2].mxu0 }
 0x164   :  { %v216_v31 = vadd.f32 %v501_v26, %v215_v30  ;;  %v584_v32 = vpop.f32.mrb[3].mxu0  ;;  %674 = vtanh.f32 %v213_v28 }
 0x166   :  { %676 = vtanh.f32 %v216_v31 }
 0x16e   :  { %v675_v33 = vpop.eup %674 }
 0x170   :  { %v677_v34 = vpop.eup %676 }
 0x171   :  { %v221_v35 = vpack.c.bf16 %v677_v34, %v675_v33 }
 0x173   :  { %602 = vmatmul.mubr.bf16.vlgmr.msra.gmra.mrb[0].mxu1 %v221_v35 }
 0x246   :  { %v327_v39 = vpop.f32.mrb[0].mxu1 }
 0x247   :  { %v328_v40 = vadd.f32 %v510_v38, %v327_v39  ;;  %v603_v41 = vpop.f32.mrb[1].mxu1 }
 0x248   :  { %v330_v42 = vpop.f32.mrb[2].mxu1 }
 0x249   :  { %v331_v43 = vadd.f32 %v510_v38, %v330_v42  ;;  %v604_v44 = vpop.f32.mrb[3].mxu1  ;;  %v334_v45 = vmax.f32 %v328_v40, 0.0 }
 0x24b   :  { %v335_v46 = vmax.f32 %v331_v43, 0.0 }
 0x24d   :  { %v336_v47 = vpack.c.bf16 %v335_v46, %v334_v45 }
 0x24f   :  { %622 = vmatmul.mubr.bf16.vlgmr.msra.gmra.mrb[4].mxu0 %v336_v47 }
 0x322   :  { %v435_v48 = vpop.f32.mrb[4].mxu0 }
 0x323   :  { %v442_v49 = vadd.f32 %v675_v33, %v435_v48  ;;  %v623_v50 = vpop.f32.mrb[5].mxu0 }
 0x324   :  { %v438_v52 = vpop.f32.mrb[6].mxu0 }
 0x325   :  { %v443_v53 = vadd.f32 %v677_v34, %v438_v52  ;;  %v624_v54 = vpop.f32.mrb[7].mxu0  ;;  %v451_v55 = vadd.f32 %v527_v51, %v442_v49 }
 0x327   :  { %v452_v56 = vadd.f32 %v527_v51, %v443_v53 }
 0x329   :  { %v536_v57 = vpack.c.bf16 %v452_v56, %v451_v55 }
 0x32b   :  { %537 = vst [vmem:[#allocation12] sm:$0xff] %v536_v57  }
 0x32c   :  { %789 = shalt.err (!%p786_p3)
}
 0x32d   :  { %s790_s7 = scalar_lea.hbm %s1026_s8, 128 }
 0x32e   :  { %p791_p4 = scmp.ne.s32.totalorder %s1026_s8, %s790_s7  ;;  %p794_p5 = scmp.lt.u32.totalorder %s790_s7, %s1026_s8 }
 0x330   :  { %p796_p6 = pnand %p794_p5, %p791_p4 }
 0x332   :  { %799 = shalt.err (!%p796_p6)
}
 0x333   :  { %474 = dma.vmem_to_hbm [thread:$0]  %s469_s18, 128, %s1026_s8, [#allocation8], %s829_s26, %s829_s26, %s830_s27  }
 0x334   :  { %816 = dma.done.wait [#allocation8], 128  }
 0x335   :  { %817 = vsyncadd [#allocation8], 4294967168 }
 0x336   :  { %478 = vsyncpa [#allocation7], 1 }
 0x337   :  { %479 = vsyncpa [#allocation10], 1 }
 0x338   :  { %480 = vsyncpa [#allocation8], 1 }
 0x339   :  { %481 = vsyncmov [#allocation3] }
 0x33c   :  { %s482_s15 = vpop.sfrf %481 }
 0x33d   :  { %p530_p7 = scmp.ne.s32.totalorder %s482_s15, 0 }
 0x33f   :  { %486 = shalt.err (%p530_p7)  }

</bundles_post_ra>
